<compile_context>
chip_gen: v6e
topology: v6e:2x2x1
jax: 0.10.0
libtpu: 0.0.40
codegen_flags: <defaults>
</compile_context>

<pallas_src>
import functools

import jax
import jax.numpy as jnp
from jax import lax
from jax.experimental import pallas as pl
from jax.experimental.pallas import tpu as pltpu

ALPHA = 0.5
BETA = 0.5
TEMP = 0.07
EPS = 1e-8
NORM_EPS = 1e-12  # F.normalize default eps


def _l2norm(x):
    # x / max(||x||_2, 1e-12), exactly like F.normalize(dim=1).
    n = jnp.sqrt(jnp.sum(x * x, axis=1, keepdims=True))
    return x / jnp.maximum(n, jnp.float32(NORM_EPS))


def hybrid_loss_kernel(
    logits_ref,  # (tB, C)   f32 row tile
    pn_ref,      # (B_pad,D) normalized projections, resident (Buffered(1))
    fn_ref,      # (B_pad,D) normalized face,        resident (Buffered(1))
    en_ref,      # (tB, D)   normalized eeg * 1/TEMP, streamed row tile
    lcol_ref,    # (tB, 1)   i32 labels column tile
    lrow_ref,    # (1, B_pad) i32 labels row, resident (Buffered(1))
    ce_ref,      # (tB, 1) f32 out: per-row CE terms
    sup_ref,     # (tB, 1) f32 out: per-row -sum(mask*logp)
    npos_ref,    # (tB, 1) f32 out: per-row sum(mask)
    cm_ref,      # (tB, 1) f32 out: per-row cross-modal CE terms
    *,
    n_pad,       # static: number of zero-padded rows/cols
):
    i = pl.program_id(0)
    tB, C = logits_ref.shape
    B_pad, _ = pn_ref.shape
    start = pl.multiple_of(i * tB, tB)
    inv_temp = jnp.float32(1.0 / TEMP)

    def mm(a, b):
        # (tB,D) x (B_pad,D), contracting dim 1 of BOTH -> (tB,B_pad); no transpose.
        return lax.dot_general(a, b, (((1,), (1,)), ((), ())),
                               preferred_element_type=jnp.float32)

    # ---------- 1) cross-entropy per-row terms (stabilized; logits are unbounded) ----------
    logits = logits_ref[...].astype(jnp.float32)
    lcol = lcol_ref[...]                                   # (tB,1) i32
    cls_iota = lax.broadcasted_iota(jnp.int32, (tB, C), 1)
    m = jnp.max(logits, axis=1, keepdims=True)
    lse = m + jnp.log(jnp.sum(jnp.exp(logits - m), axis=1, keepdims=True))
    picked = jnp.sum(jnp.where(lcol == cls_iota, logits, 0.0), axis=1, keepdims=True)
    ce_ref[...] = lse - picked

    # ---------- 2) supervised contrastive per-row terms ----------
    pn_rows = pn_ref[pl.ds(start, tB), :]                  # row slice of resident operand
    a = (pn_rows.astype(jnp.float32) * inv_temp).astype(pn_rows.dtype)  # fold 1/TEMP (rows only)
    sim = mm(a, pn_ref[...])                               # (tB, B_pad)

    row_g = start + lax.broadcasted_iota(jnp.int32, (tB, B_pad), 0)
    col_g = lax.broadcasted_iota(jnp.int32, (tB, B_pad), 1)
    lrow = lrow_ref[...]                                   # (1, B_pad) i32 (padded labels = -1)
    mask = jnp.where(jnp.logical_and(lcol == lrow, row_g != col_g), 1.0, 0.0)

    # Unstabilized denominator matches the torch reference (sim <= 1/TEMP ~ 14.3).
    den = jnp.sum(jnp.exp(sim), axis=1, keepdims=True)
    if n_pad:
        den = den - jnp.float32(n_pad)                     # padded cols contribute exactly exp(0)=1
    logp = sim - jnp.log(den + jnp.float32(EPS))
    sup_ref[...] = -jnp.sum(mask * logp, axis=1, keepdims=True)
    npos_ref[...] = jnp.sum(mask, axis=1, keepdims=True)

    # ---------- 3) cross-modal contrastive per-row terms ----------
    en_rows = en_ref[...]                                  # already normalized * 1/TEMP
    cm = mm(en_rows, fn_ref[...])                          # (tB, B_pad)
    s = jnp.sum(jnp.exp(cm), axis=1, keepdims=True)        # unstabilized LSE: cm <= 1/TEMP
    if n_pad:
        s = s - jnp.float32(n_pad)
    fn_rows = fn_ref[pl.ds(start, tB), :]
    diag = jnp.sum(en_rows.astype(jnp.float32) * fn_rows.astype(jnp.float32),
                   axis=1, keepdims=True)                  # direct diagonal, no eye matrix
    cm_ref[...] = jnp.log(s) - diag


def hybrid_loss(logits, projections, eeg_proj, face_proj, labels, *,
                block_rows=256,                 # 256 fills the v6e/v7x MXU; use 128 on v5e
                matmul_dtype=jnp.float32,       # bf16 recommended in production
                vmem_limit_bytes=48 * 1024 * 1024):
    logits = logits.astype(jnp.float32)
    B, C = logits.shape
    D = projections.shape[1]

    # Hoisted (one-pass) normalization of all operands; 1/TEMP folded into the row-only
    # eeg operand here, and into the projections ROW slice inside the kernel.
    pn = _l2norm(projections.astype(jnp.float32)).astype(matmul_dtype)
    fn = _l2norm(face_proj.astype(jnp.float32)).astype(matmul_dtype)
    en = (_l2norm(eeg_proj.astype(jnp.float32)) * jnp.float32(1.0 / TEMP)).astype(matmul_dtype)
    labels = labels.astype(jnp.int32)

    # Row-tile size (multiple of 8) and padded batch.
    B8 = ((B + 7) // 8) * 8
    tB = block_rows if B8 >= block_rows else B8
    B_pad = ((B + tB - 1) // tB) * tB
    n_pad = B_pad - B

    if n_pad:
        logits = jnp.pad(logits, ((0, n_pad), (0, 0)))
        pn = jnp.pad(pn, ((0, n_pad), (0, 0)))
        fn = jnp.pad(fn, ((0, n_pad), (0, 0)))
        en = jnp.pad(en, ((0, n_pad), (0, 0)))
        labels = jnp.pad(labels, ((0, n_pad),), constant_values=-1)

    lcol = labels.reshape(B_pad, 1)
    lrow = labels.reshape(1, B_pad)

    grid = (B_pad // tB,)
    kernel = functools.partial(hybrid_loss_kernel, n_pad=n_pad)

    row_out = jax.ShapeDtypeStruct((B_pad, 1), jnp.float32)

    ce_rows, sup_rows, npos_rows, cm_rows = pl.pallas_call(
        kernel,
        out_shape=(row_out, row_out, row_out, row_out),
        grid=grid,
        in_specs=[
            pl.BlockSpec((tB, C), lambda i: (i, 0)),                       # logits tile
            pl.BlockSpec((B_pad, D), lambda i: (0, 0),
                         pipeline_mode=pl.Buffered(1)),                    # projections (resident)
            pl.BlockSpec((B_pad, D), lambda i: (0, 0),
                         pipeline_mode=pl.Buffered(1)),                    # face (resident)
            pl.BlockSpec((tB, D), lambda i: (i, 0)),                       # eeg row tile
            pl.BlockSpec((tB, 1), lambda i: (i, 0)),                       # labels column tile
            pl.BlockSpec((1, B_pad), lambda i: (0, 0),
                         pipeline_mode=pl.Buffered(1)),                    # labels row (resident)
        ],
        out_specs=[pl.BlockSpec((tB, 1), lambda i: (i, 0)) for _ in range(4)],
        compiler_params=pltpu.CompilerParams(
            dimension_semantics=("parallel",),     # steps are independent -> multi-TC friendly
            vmem_limit_bytes=vmem_limit_bytes,
        ),
    )(logits, pn, fn, en, lcol, lrow)

    # Trivial final combine (O(B)); padded rows sliced off.
    Bf = jnp.float32(B)
    ce_loss = jnp.sum(ce_rows[:B, 0]) / Bf
    supcon_loss = jnp.sum(sup_rows[:B, 0]) / (jnp.sum(npos_rows[:B, 0]) + jnp.float32(EPS))
    crossmodal_loss = jnp.sum(cm_rows[:B, 0]) / Bf
    return ce_loss + ALPHA * supcon_loss + BETA * crossmodal_loss


def hybrid_loss_ref(logits, projections, eeg_proj, face_proj, labels):
    # pure-JAX reference mirroring the PyTorch module
    B = logits.shape[0]
    lse = jax.nn.logsumexp(logits, axis=1)
    ce = jnp.mean(lse - logits[jnp.arange(B), labels])

    def norm(x):
        return x / jnp.maximum(jnp.linalg.norm(x, axis=1, keepdims=True), NORM_EPS)

    pn = norm(projections)
    sim = pn @ pn.T / TEMP
    mask = (labels[:, None] == labels[None, :]).astype(jnp.float32) - jnp.eye(B)
    logp = sim - jnp.log(jnp.sum(jnp.exp(sim), axis=1, keepdims=True) + EPS)
    supcon = -jnp.sum(mask * logp) / (jnp.sum(mask) + EPS)

    en, fcn = norm(eeg_proj), norm(face_proj)
    cm = en @ fcn.T / TEMP
    lse2 = jax.nn.logsumexp(cm, axis=1)
    cml = jnp.mean(lse2 - jnp.diag(cm))
    return ce + ALPHA * supcon + BETA * cml


if __name__ == "__main__":
    B, C, D = 8, 4, 32
    key = jax.random.PRNGKey(0)
    k1, k2, k3, k4, k5 = jax.random.split(key, 5)
    logits = jax.random.normal(k1, (B, C), dtype=jnp.float32)
    projections = jax.random.normal(k2, (B, D), dtype=jnp.float32)
    eeg_proj = jax.random.normal(k3, (B, D), dtype=jnp.float32)
    face_proj = jax.random.normal(k4, (B, D), dtype=jnp.float32)
    labels = jax.random.randint(k5, (B,), 0, C, dtype=jnp.int32)

    loss = jax.block_until_ready(
        hybrid_loss(logits, projections, eeg_proj, face_proj, labels)
    )
    ref = hybrid_loss_ref(logits, projections, eeg_proj, face_proj, labels)
    assert jnp.allclose(loss, ref, rtol=1e-4, atol=1e-4), (loss, ref)
    print("KERNEL_OK")
</pallas_src>

<mosaic_0001>
module attributes {stable_mosaic.version = 11 : i64} {
  func.func @hybrid_loss_kernel(%arg0: i32, %arg1: memref<8x4xf32, #tpu.memory_space<vmem>>, %arg2: memref<8x32xf32, #tpu.memory_space<vmem>>, %arg3: memref<8x32xf32, #tpu.memory_space<vmem>>, %arg4: memref<8x32xf32, #tpu.memory_space<vmem>>, %arg5: memref<8x1xi32, #tpu.memory_space<vmem>>, %arg6: memref<1x8xi32, #tpu.memory_space<vmem>>, %arg7: memref<8x1xf32, #tpu.memory_space<vmem>>, %arg8: memref<8x1xf32, #tpu.memory_space<vmem>>, %arg9: memref<8x1xf32, #tpu.memory_space<vmem>>, %arg10: memref<8x1xf32, #tpu.memory_space<vmem>>) attributes {dimension_semantics = [#tpu.dimension_semantics<parallel>], iteration_bounds = array<i64: 1>, scalar_prefetch = 0 : i64, scratch_operands = 0 : i64, tpu.core_type = #tpu.core_type<tc>, window_params = [{transform_indices = @transform_0, window_bounds = array<i64: 8, 4>}, {pipeline_mode = #tpu.pipeline_mode<synchronous>, transform_indices = @transform_1, window_bounds = array<i64: 8, 32>}, {pipeline_mode = #tpu.pipeline_mode<synchronous>, transform_indices = @transform_2, window_bounds = array<i64: 8, 32>}, {transform_indices = @transform_3, window_bounds = array<i64: 8, 32>}, {transform_indices = @transform_4, window_bounds = array<i64: 8, 1>}, {pipeline_mode = #tpu.pipeline_mode<synchronous>, transform_indices = @transform_5, window_bounds = array<i64: 1, 8>}, {transform_indices = @transform_6, window_bounds = array<i64: 8, 1>}, {transform_indices = @transform_7, window_bounds = array<i64: 8, 1>}, {transform_indices = @transform_8, window_bounds = array<i64: 8, 1>}, {transform_indices = @transform_9, window_bounds = array<i64: 8, 1>}]} {
    %c8_i32 = arith.constant 8 : i32
    %0 = arith.muli %arg0, %c8_i32 : i32
    %1 = tpu.assume_multiple %0, 8 : i32
    %c0 = arith.constant 0 : index
    %c0_0 = arith.constant 0 : index
    %2 = vector.load %arg1[%c0, %c0_0] : memref<8x4xf32, #tpu.memory_space<vmem>>, vector<8x4xf32>
    %c0_1 = arith.constant 0 : index
    %c0_2 = arith.constant 0 : index
    %3 = vector.load %arg5[%c0_1, %c0_2] : memref<8x1xi32, #tpu.memory_space<vmem>>, vector<8x1xi32>
    %4 = tpu.iota {dimensions = array<i32: 1>} : vector<8x4xi32>
    %cst = arith.constant dense<0xFF800000> : vector<8xf32>
    %5 = vector.multi_reduction <maximumf>, %2, %cst [1] : vector<8x4xf32> to vector<8xf32>
    %6 = vector.shape_cast %5 : vector<8xf32> to vector<8x1xf32>
    %7 = vector.broadcast %6 : vector<8x1xf32> to vector<8x4xf32>
    %8 = arith.subf %2, %7 : vector<8x4xf32>
    %9 = math.exp %8 : vector<8x4xf32>
    %cst_3 = arith.constant dense<0.000000e+00> : vector<8xf32>
    %10 = vector.multi_reduction <add>, %9, %cst_3 [1] : vector<8x4xf32> to vector<8xf32>
    %11 = vector.shape_cast %10 : vector<8xf32> to vector<8x1xf32>
    %12 = math.log %11 : vector<8x1xf32>
    %13 = arith.addf %6, %12 : vector<8x1xf32>
    %14 = vector.broadcast %3 : vector<8x1xi32> to vector<8x4xi32>
    %15 = arith.cmpi eq, %14, %4 : vector<8x4xi32>
    %cst_4 = arith.constant 0.000000e+00 : f32
    %16 = vector.broadcast %cst_4 : f32 to vector<8x4xf32>
    %17 = arith.select %15, %2, %16 : vector<8x4xi1>, vector<8x4xf32>
    %cst_5 = arith.constant dense<0.000000e+00> : vector<8xf32>
    %18 = vector.multi_reduction <add>, %17, %cst_5 [1] : vector<8x4xf32> to vector<8xf32>
    %19 = vector.shape_cast %18 : vector<8xf32> to vector<8x1xf32>
    %20 = arith.subf %13, %19 : vector<8x1xf32>
    %c0_6 = arith.constant 0 : index
    %c0_7 = arith.constant 0 : index
    %21 = vector.load %arg7[%c0_6, %c0_7] : memref<8x1xf32, #tpu.memory_space<vmem>>, vector<8x1xf32>
    tpu.vector_store %arg7[%c0_6, %c0_7], %20 {strides = array<i32>} : memref<8x1xf32, #tpu.memory_space<vmem>>, vector<8x1xf32>,
    %22 = arith.index_cast %1 : i32 to index
    %c0_8 = arith.constant 0 : index
    %23 = vector.load %arg2[%22, %c0_8] : memref<8x32xf32, #tpu.memory_space<vmem>>, vector<8x32xf32>
    %cst_9 = arith.constant 14.2857141 : f32
    %24 = vector.broadcast %cst_9 : f32 to vector<8x32xf32>
    %25 = arith.mulf %23, %24 : vector<8x32xf32>
    %c0_10 = arith.constant 0 : index
    %c0_11 = arith.constant 0 : index
    %26 = vector.load %arg2[%c0_10, %c0_11] : memref<8x32xf32, #tpu.memory_space<vmem>>, vector<8x32xf32>
    %cst_12 = arith.constant dense<0.000000e+00> : vector<8x8xf32>
    %27 = tpu.matmul %25, %26, %cst_12 {dimension_numbers = #tpu.dot_dimension_numbers<[1], [1], [0], [0], [0, 0, 1, 0], [], []>} : vector<8x32xf32>, vector<8x32xf32>, vector<8x8xf32> -> vector<8x8xf32>
    %28 = tpu.iota {dimensions = array<i32: 0>} : vector<8x8xi32>
    %29 = vector.broadcast %1 : i32 to vector<8x8xi32>
    %30 = arith.addi %29, %28 : vector<8x8xi32>
    %31 = tpu.iota {dimensions = array<i32: 1>} : vector<8x8xi32>
    %c0_13 = arith.constant 0 : index
    %c0_14 = arith.constant 0 : index
    %32 = vector.load %arg6[%c0_13, %c0_14] : memref<1x8xi32, #tpu.memory_space<vmem>>, vector<1x8xi32>
    %33 = vector.broadcast %3 : vector<8x1xi32> to vector<8x8xi32>
    %34 = vector.broadcast %32 : vector<1x8xi32> to vector<8x8xi32>
    %35 = arith.cmpi eq, %33, %34 : vector<8x8xi32>
    %36 = arith.cmpi ne, %30, %31 : vector<8x8xi32>
    %37 = arith.andi %35, %36 : vector<8x8xi1>
    %cst_15 = arith.constant 1.000000e+00 : f32
    %cst_16 = arith.constant 0.000000e+00 : f32
    %38 = vector.broadcast %cst_15 : f32 to vector<8x8xf32>
    %39 = vector.broadcast %cst_16 : f32 to vector<8x8xf32>
    %40 = arith.select %37, %38, %39 : vector<8x8xi1>, vector<8x8xf32>
    %41 = math.exp %27 : vector<8x8xf32>
    %cst_17 = arith.constant dense<0.000000e+00> : vector<8xf32>
    %42 = vector.multi_reduction <add>, %41, %cst_17 [1] : vector<8x8xf32> to vector<8xf32>
    %43 = vector.shape_cast %42 : vector<8xf32> to vector<8x1xf32>
    %cst_18 = arith.constant 9.99999993E-9 : f32
    %44 = vector.broadcast %cst_18 : f32 to vector<8x1xf32>
    %45 = arith.addf %43, %44 : vector<8x1xf32>
    %46 = math.log %45 : vector<8x1xf32>
    %47 = vector.broadcast %46 : vector<8x1xf32> to vector<8x8xf32>
    %48 = arith.subf %27, %47 : vector<8x8xf32>
    %49 = arith.mulf %40, %48 : vector<8x8xf32>
    %cst_19 = arith.constant dense<0.000000e+00> : vector<8xf32>
    %50 = vector.multi_reduction <add>, %49, %cst_19 [1] : vector<8x8xf32> to vector<8xf32>
    %51 = vector.shape_cast %50 : vector<8xf32> to vector<8x1xf32>
    %cst_20 = arith.constant 0.000000e+00 : f32
    %52 = vector.broadcast %cst_20 : f32 to vector<8x1xf32>
    %53 = arith.subf %52, %51 : vector<8x1xf32>
    %c0_21 = arith.constant 0 : index
    %c0_22 = arith.constant 0 : index
    %54 = vector.load %arg8[%c0_21, %c0_22] : memref<8x1xf32, #tpu.memory_space<vmem>>, vector<8x1xf32>
    tpu.vector_store %arg8[%c0_21, %c0_22], %53 {strides = array<i32>} : memref<8x1xf32, #tpu.memory_space<vmem>>, vector<8x1xf32>,
    %cst_23 = arith.constant dense<0.000000e+00> : vector<8xf32>
    %55 = vector.multi_reduction <add>, %40, %cst_23 [1] : vector<8x8xf32> to vector<8xf32>
    %56 = vector.shape_cast %55 : vector<8xf32> to vector<8x1xf32>
    %c0_24 = arith.constant 0 : index
    %c0_25 = arith.constant 0 : index
    %57 = vector.load %arg9[%c0_24, %c0_25] : memref<8x1xf32, #tpu.memory_space<vmem>>, vector<8x1xf32>
    tpu.vector_store %arg9[%c0_24, %c0_25], %56 {strides = array<i32>} : memref<8x1xf32, #tpu.memory_space<vmem>>, vector<8x1xf32>,
    %c0_26 = arith.constant 0 : index
    %c0_27 = arith.constant 0 : index
    %58 = vector.load %arg4[%c0_26, %c0_27] : memref<8x32xf32, #tpu.memory_space<vmem>>, vector<8x32xf32>
    %c0_28 = arith.constant 0 : index
    %c0_29 = arith.constant 0 : index
    %59 = vector.load %arg3[%c0_28, %c0_29] : memref<8x32xf32, #tpu.memory_space<vmem>>, vector<8x32xf32>
    %cst_30 = arith.constant dense<0.000000e+00> : vector<8x8xf32>
    %60 = tpu.matmul %58, %59, %cst_30 {dimension_numbers = #tpu.dot_dimension_numbers<[1], [1], [0], [0], [0, 0, 1, 0], [], []>} : vector<8x32xf32>, vector<8x32xf32>, vector<8x8xf32> -> vector<8x8xf32>
    %61 = math.exp %60 : vector<8x8xf32>
    %cst_31 = arith.constant dense<0.000000e+00> : vector<8xf32>
    %62 = vector.multi_reduction <add>, %61, %cst_31 [1] : vector<8x8xf32> to vector<8xf32>
    %63 = vector.shape_cast %62 : vector<8xf32> to vector<8x1xf32>
    %64 = arith.index_cast %1 : i32 to index
    %c0_32 = arith.constant 0 : index
    %65 = vector.load %arg3[%64, %c0_32] : memref<8x32xf32, #tpu.memory_space<vmem>>, vector<8x32xf32>
    %66 = arith.mulf %58, %65 : vector<8x32xf32>
    %cst_33 = arith.constant dense<0.000000e+00> : vector<8xf32>
    %67 = vector.multi_reduction <add>, %66, %cst_33 [1] : vector<8x32xf32> to vector<8xf32>
    %68 = vector.shape_cast %67 : vector<8xf32> to vector<8x1xf32>
    %69 = math.log %63 : vector<8x1xf32>
    %70 = arith.subf %69, %68 : vector<8x1xf32>
    %c0_34 = arith.constant 0 : index
    %c0_35 = arith.constant 0 : index
    %71 = vector.load %arg10[%c0_34, %c0_35] : memref<8x1xf32, #tpu.memory_space<vmem>>, vector<8x1xf32>
    tpu.vector_store %arg10[%c0_34, %c0_35], %70 {strides = array<i32>} : memref<8x1xf32, #tpu.memory_space<vmem>>, vector<8x1xf32>,
    return
  }
  func.func @transform_0(%arg0: i32) -> (i32, i32) {
    %c0_i32 = arith.constant 0 : i32
    %c0_i32_0 = arith.constant 0 : i32
    return %arg0, %c0_i32 : i32, i32
  }
  func.func @transform_1(%arg0: i32) -> (i32, i32) {
    %c0_i32 = arith.constant 0 : i32
    %c0_i32_0 = arith.constant 0 : i32
    %c0_i32_1 = arith.constant 0 : i32
    return %c0_i32, %c0_i32_0 : i32, i32
  }
  func.func @transform_2(%arg0: i32) -> (i32, i32) {
    %c0_i32 = arith.constant 0 : i32
    %c0_i32_0 = arith.constant 0 : i32
    %c0_i32_1 = arith.constant 0 : i32
    return %c0_i32, %c0_i32_0 : i32, i32
  }
  func.func @transform_3(%arg0: i32) -> (i32, i32) {
    %c0_i32 = arith.constant 0 : i32
    %c0_i32_0 = arith.constant 0 : i32
    return %arg0, %c0_i32 : i32, i32
  }
  func.func @transform_4(%arg0: i32) -> (i32, i32) {
    %c0_i32 = arith.constant 0 : i32
    %c0_i32_0 = arith.constant 0 : i32
    return %arg0, %c0_i32 : i32, i32
  }
  func.func @transform_5(%arg0: i32) -> (i32, i32) {
    %c0_i32 = arith.constant 0 : i32
    %c0_i32_0 = arith.constant 0 : i32
    %c0_i32_1 = arith.constant 0 : i32
    return %c0_i32, %c0_i32_0 : i32, i32
  }
  func.func @transform_6(%arg0: i32) -> (i32, i32) {
    %c0_i32 = arith.constant 0 : i32
    %c0_i32_0 = arith.constant 0 : i32
    return %arg0, %c0_i32 : i32, i32
  }
  func.func @transform_7(%arg0: i32) -> (i32, i32) {
    %c0_i32 = arith.constant 0 : i32
    %c0_i32_0 = arith.constant 0 : i32
    return %arg0, %c0_i32 : i32, i32
  }
  func.func @transform_8(%arg0: i32) -> (i32, i32) {
    %c0_i32 = arith.constant 0 : i32
    %c0_i32_0 = arith.constant 0 : i32
    return %arg0, %c0_i32 : i32, i32
  }
  func.func @transform_9(%arg0: i32) -> (i32, i32) {
    %c0_i32 = arith.constant 0 : i32
    %c0_i32_0 = arith.constant 0 : i32
    return %arg0, %c0_i32 : i32, i32
  }
}

</mosaic_0001>

<bundles_post_ra>
// kernel: tpu_custom_call.1
= control target key start
LH: loop header
LB: loop body
LE: loop exit
PB: predicated region body
PF: predicated region fallthrough
CT: control target
= control target key end

     0   :  { %vm60_vm0 = vcmask 261120   ;;  %vm32_vm1 = vcmask 31744   ;;  %v315_v0 = vmov 0.0   ;;  %vm316_vm2 = vmmov 0   ;;  %s420_s1 = inlined_call_operand.vmem [shape: f32[8,32], index: 1, kind: input, shape index: {}]   ;;  %s421_s2 = inlined_call_operand.vmem [shape: f32[8,32], index: 2, kind: input, shape index: {}]   ;;  %s422_s3 = inlined_call_operand.vmem [shape: f32[8,32], index: 3, kind: input, shape index: {}]   ;;  %s423_s0 = inlined_call_operand.vmem [shape: f32[8,4], index: 0, kind: input, shape index: {}]   ;;  %s424_s4 = inlined_call_operand.vmem [shape: s32[8,1], index: 4, kind: input, shape index: {}]   ;;  %s425_s5 = inlined_call_operand.vmem [shape: s32[1,8], index: 5, kind: input, shape index: {}]   ;;  %s426_s6 = inlined_call_operand.vmem [shape: f32[8,1], index: 6, kind: output, shape index: {0}]   ;;  %s427_s9 = inlined_call_operand.vmem [shape: f32[8,1], index: 9, kind: output, shape index: {3}]   ;;  %s428_s7 = inlined_call_operand.vmem [shape: f32[8,1], index: 7, kind: output, shape index: {1}]   ;;  %s429_s8 = inlined_call_operand.vmem [shape: f32[8,1], index: 8, kind: output, shape index: {2}]  }
   0x1   :  { %288 = vmatprep.subr.mxu0 %v315_v0  ;;  %v57_v1 = vld [vmem:[%s420_s1] sm:$0xff]  ;;  %290 = vmatprep.mubr.msk.f32.mxu0 %vm316_vm2, %v315_v0  ;;  %v317_v8 = vmov 0   ;;  %v30_v9 = vlaneseq  ;;  %vm152_vm4 = vcmask 64512   ;;  %vm54_vm6 = vcmask 7168  }
   0x2   :  { %v171_v2 = vld [vmem:[%s421_s2] sm:$0xff]  ;;  %v58_v3 = vmul.f32 14.285714, %v57_v1  ;;  %289 = vmatpush3.xpose.msk.msra.mxu0 %vm60_vm0, %v57_v1  ;;  %293 = vmatprep.subr.mxu1 %v315_v0 }
   0x3   :  { %v28_v4 = vld [vmem:[%s423_s0] sm:$0xff]  ;;  %294 = vmatpush3.xpose.msk.msra.mxu1 %vm60_vm0, %v171_v2  ;;  %295 = vmatprep.mubr.msk.f32.mxu1 %vm316_vm2, %v315_v0  ;;  %v31_v10 = vand.u32 127, %v30_v9  ;;  %v138_v11 = vshrl.u32 %v30_v9, 7 }
   0x4   :  { %v29_v5 = vld [vmem:[%s424_s4] sm:$0xff]  ;;  %v33_v7 = vsel %vm32_vm1, %v28_v4, -inf  ;;  %301 = vset.pattern.permute.xlu1 %v317_v8  ;;  %302 = vset.pattern.permute.xlu0 %v317_v8 }
   0x5   :  { %v170_v6 = vld [vmem:[%s422_s3] sm:$0xff]  ;;  %34 = vmax.xlane.f32.xlu0 %v33_v7  ;;  %291 = vmatmul.mubr.msk.f32.vlgmr.msra.gmra.mxu0 %vm60_vm0, %v58_v3  ;;  %vm147_vm3 = vcmp.ne.s32.totalorder %v138_v11, %v31_v10 }
   0x6   :  { %46 = vperm.xlu1 %301, %v29_v5   ;;  %296 = vmatmul.mubr.msk.f32.vlgmr.msra.gmra.mxu1 %vm60_vm0, %v170_v6  ;;  %v255_v30 = vmul.f32 %v171_v2, %v170_v6  ;;  %v281_v41 = vld [vmem:[%s425_s5] ss:$0 sm:$0xff] }
   0x8   :  { %v256_v31 = vsel %vm60_vm0, %v255_v30, 0.0 }
  0x81   :  { %v47_v23 = vpop.permute.xlu1 %46 }
  0x82   :  { %vm48_vm5 = vcmp.eq.s32.totalorder %v47_v23, %v31_v10  ;;  %vm146_vm7 = vcmp.eq.s32.totalorder %v47_v23, %v281_v41 }
  0x83   :  { %v49_v28 = vsel %vm48_vm5, %v28_v4, 0.0  ;;  %vm148_vm8 = vmand %vm146_vm7, %vm147_vm3 }
  0x84   :  { %v50_v29 = vsel %vm32_vm1, %v49_v28, 0.0  ;;  %v149_v45 = vsel %vm148_vm8, 1.0, %v315_v0 }
  0x85   :  { %v166_v50 = vsel %vm152_vm4, %v149_v45, 0.0 }
  0x8e   :  { %v35_v12 = vpop.xlane.xlu0 %34 }
  0x8f   :  { %v36_v13 = vsub.f32 %v28_v4, %v35_v12 }
  0x91   :  { %v37_v14 = vmul.f32 1.442695, %v36_v13 }
  0x93   :  { %303 = vpow2.f32 %v37_v14 }
  0xa0   :  { %v304_v15 = vpop.eup %303 }
  0xa1   :  { %v39_v16 = vsel %vm32_vm1, %v304_v15, 0.0 }
  0xa2   :  { %40 = vadd.xlane.f32.xlu1 %v39_v16 }
  0xc5   :  { %v133_v17 = vpop.f32.mrf.mxu0 }
  0xc6   :  { %v150_v18 = vmul.f32 1.442695, %v133_v17  ;;  %v244_v19 = vpop.f32.mrf.mxu1 }
  0xc7   :  { %v292_v20 = vpop.f32.mrf.mxu0  ;;  %v248_v21 = vmul.f32 1.442695, %v244_v19 }
  0xc8   :  { %305 = vpow2.f32 %v150_v18  ;;  %v297_v22 = vpop.f32.mrf.mxu1 }
  0xc9   :  { %307 = vpow2.f32 %v248_v21 }
  0xd5   :  { %v306_v24 = vpop.eup %305 }
  0xd6   :  { %v308_v25 = vpop.eup %307  ;;  %v153_v26 = vsel %vm152_vm4, %v306_v24, 0.0 }
  0xd7   :  { %154 = vadd.xlane.f32.xlu0 %v153_v26  ;;  %v250_v27 = vsel %vm152_vm4, %v308_v25, 0.0 }
  0xdb   :  { %251 = vadd.xlane.f32.xlu0 %v250_v27 }
  0xdf   :  { %51 = vadd.xlane.f32.xlu0 %v50_v29 }
  0xe3   :  { %257 = vadd.xlane.f32.xlu0 %v256_v31 }
 0x12b   :  { %v41_v32 = vpop.xlane.xlu1 %40 }
 0x12c   :  { %309 = vlog2.f32 %v41_v32 }
 0x139   :  { %v310_v33 = vpop.eup %309 }
 0x13a   :  { %v43_v36 = vmul.f32 0.6931472, %v310_v33 }
 0x13c   :  { %v44_v38 = vadd.f32 %v43_v36, %v35_v12 }
 0x160   :  { %v155_v34 = vpop.xlane.xlu0 %154 }
 0x161   :  { %v156_v35 = vadd.f32 1e-08, %v155_v34 }
 0x163   :  { %311 = vlog2.f32 %v156_v35 }
 0x164   :  { %v252_v37 = vpop.xlane.xlu0 %251 }
 0x165   :  { %313 = vlog2.f32 %v252_v37 }
 0x168   :  { %v52_v39 = vpop.xlane.xlu0 %51 }
 0x169   :  { %v53_v40 = vsub.f32 %v44_v38, %v52_v39 }
 0x16b   :  { %55 = vst.msk [vmem:[%s426_s6] sm:$0xff] %vm54_vm6, %v53_v40 }
 0x16c   :  { %v258_v51 = vpop.xlane.xlu0 %257 }
 0x170   :  { %v312_v42 = vpop.eup %311 }
 0x171   :  { %v158_v43 = vmul.f32 0.6931472, %v312_v42 }
 0x172   :  { %v314_v47 = vpop.eup %313 }
 0x173   :  { %v159_v44 = vsub.f32 %v133_v17, %v158_v43  ;;  %v260_v49 = vmul.f32 0.6931472, %v314_v47 }
 0x175   :  { %v160_v46 = vmul.f32 %v159_v44, %v149_v45  ;;  %v261_v52 = vsub.f32 %v260_v49, %v258_v51 }
 0x177   :  { %v161_v48 = vsel %vm152_vm4, %v160_v46, 0.0  ;;  %262 = vst.msk [vmem:[%s427_s9] sm:$0xff] %vm54_vm6, %v261_v52 }
 0x178   :  { %162 = vadd.xlane.f32.xlu0 %v161_v48 }
 0x17c   :  { %167 = vadd.xlane.f32.xlu0 %v166_v50 }
 0x201   :  { %v163_v53 = vpop.xlane.xlu0 %162 }
 0x202   :  { %v164_v54 = vsub.f32 0.0, %v163_v53 }
 0x204   :  { %165 = vst.msk [vmem:[%s428_s7] sm:$0xff] %vm54_vm6, %v164_v54 }
 0x205   :  { %v168_v55 = vpop.xlane.xlu0 %167 }
 0x206   :  { %169 = vst.msk [vmem:[%s429_s8] sm:$0xff] %vm54_vm6, %v168_v55 }

</bundles_post_ra>
